<compile_context>
chip_gen: v6e
topology: v6e:2x2x1
jax: 0.10.0
libtpu: 0.0.40
codegen_flags: <defaults>
</compile_context>

<pallas_src>
import jax
import jax.numpy as jnp
from jax.experimental import pallas as pl
from jax.experimental.pallas import tpu as pltpu


def _round_up(v, m):
    return ((v + m - 1) // m) * m


def _pnorm(diff, norm):
    """p-norm over the last (feature/lane) axis; `diff` is float32."""
    if norm == 2:
        return jnp.sqrt(jnp.sum(diff * diff, axis=-1))
    if norm == 1:
        return jnp.sum(jnp.abs(diff), axis=-1)
    p = float(norm)
    return jnp.power(jnp.sum(jnp.power(jnp.abs(diff), p), axis=-1), 1.0 / p)


def _make_flux_kernel(lag_abs, norm, tile, self_flux):
    """out_pad[b, n] = || a[b, n, :] - b[b, n - lag_abs, :] ||_p  (per tile).

    a == b (single input stream) for the self-flux case.  The first `lag_abs`
    frames of each tile read the previous tile's tail from `carry_ref`; the
    junk produced for n < lag_abs in the very first tile is sliced off by the
    wrapper.
    """

    def kernel(*refs):
        if self_flux:
            a_ref, out_ref, carry_ref = refs
        else:
            a_ref, b_ref, out_ref, carry_ref = refs

        a = a_ref[...].astype(jnp.float32)
        b = a if self_flux else b_ref[...].astype(jnp.float32)

        if lag_abs == 0:
            out_ref[...] = _pnorm(a - b, norm).astype(out_ref.dtype)
            return

        j = pl.program_id(1)  # frame-tile index (inner, sequential axis)

        @pl.when(j == 0)
        def _init_carry():
            carry_ref[...] = jnp.zeros_like(carry_ref)

        prev = carry_ref[...]  # (Bt, L, D): last L frames of previous tile of b

        # frames [L, T): both operands live in the current tile (aligned slices)
        flux_hi = _pnorm(a[:, lag_abs:, :] - b[:, : tile - lag_abs, :], norm)
        # frames [0, L): lagged operand comes from the carried previous tile
        flux_lo = _pnorm(a[:, :lag_abs, :] - prev, norm)

        out_ref[:, :lag_abs] = flux_lo.astype(out_ref.dtype)
        out_ref[:, lag_abs:] = flux_hi.astype(out_ref.dtype)

        # carry the last L frames of b into the next frame tile
        carry_ref[...] = b[:, tile - lag_abs:, :]

    return kernel


def flux(x, y=None, *, lag=1, norm=2, reduction="mean", frame_tile=None):
    """JAX/Pallas equivalent of diffsptk.Flux.forward."""
    assert reduction in ("none", "mean", "batchmean", "sum")
    self_flux = y is None
    if self_flux:
        y = x
    if x.ndim == 1:
        x = x[:, None]
        y = y[:, None]

    *lead, n, d = x.shape
    bsz = 1
    for s in lead:
        bsz *= s
    x3 = x.reshape(bsz, n, d)
    y3 = y.reshape(bsz, n, d)

    lag = int(lag)
    lag_abs = abs(lag)
    m = n - lag_abs
    assert m > 0, "lag too large for the number of frames"

    # out_pad[b, t] = ||a[b, t] - b[b, t - L]||  ->  flux = out_pad[:, L:L+m]
    if lag >= 0:
        a3, b3 = x3, y3
    else:
        a3, b3 = y3, x3
    operands = (a3,) if self_flux else (a3, b3)

    # ---- tiling -------------------------------------------------------------
    # Batch tile: full batch (exempt from the sublane rule) or 8.
    bt = bsz if bsz <= 8 else 8
    nbt = pl.cdiv(bsz, bt)

    itemsize = x3.dtype.itemsize
    if frame_tile is not None:
        t = max(int(frame_tile), 8)
    else:
        # size the frame tile so double-buffered input blocks stay <= ~8 MiB
        per_frame_bytes = max(bt * d * itemsize, 1)
        t = (8 * 1024 * 1024) // (2 * len(operands) * per_frame_bytes)
        t = min(t, 1024)
    t = max(t, lag_abs + 1)                 # the carry spans at most one tile
    if t >= n:
        t = n                               # single tile: block == full frame axis
    else:
        t = max(128, (t // 128) * 128)      # lane-dense multiple-of-128 out blocks
        t = max(t, _round_up(lag_abs + 1, 128))
        if t >= n:
            t = n

    nt = pl.cdiv(n, t)
    np_frames = nt * t                      # padded output frame count

    kernel = _make_flux_kernel(lag_abs, norm, t, self_flux)

    in_specs = [pl.BlockSpec((bt, t, d), lambda bi, j: (bi, j, 0)) for _ in operands]
    out_spec = pl.BlockSpec((bt, t), lambda bi, j: (bi, j))

    # advisory cost estimate: the kernel is HBM-bandwidth bound
    cost = pl.CostEstimate(
        flops=int(3 * bsz * n * d),
        transcendentals=int(bsz * n if norm == 2 else (0 if norm == 1 else 2 * bsz * n * d)),
        bytes_accessed=int(len(operands) * bsz * n * d * itemsize + bsz * np_frames * 4),
    )

    # raise the scoped-VMEM limit only when the double-buffered blocks need it
    block_bytes = bt * t * d * itemsize
    vmem_needed = (2 * len(operands) * block_bytes
                   + 2 * bt * t * 4
                   + bt * max(lag_abs, 1) * d * 4)
    cp_kwargs = dict(dimension_semantics=("parallel", "arbitrary"))
    if vmem_needed > 24 * 1024 * 1024:
        cp_kwargs["vmem_limit_bytes"] = int(min(vmem_needed + (8 << 20), 56 << 20))

    out_pad = pl.pallas_call(
        kernel,
        out_shape=jax.ShapeDtypeStruct((bsz, np_frames), jnp.float32),
        grid_spec=pltpu.PrefetchScalarGridSpec(
            num_scalar_prefetch=0,
            grid=(nbt, nt),
            in_specs=in_specs,
            out_specs=out_spec,
            scratch_shapes=[pltpu.VMEM((bt, max(lag_abs, 1), d), jnp.float32)],
        ),
        compiler_params=pltpu.CompilerParams(**cp_kwargs),
        cost_estimate=cost,
    )(*operands)

    flux_nf = out_pad[:, lag_abs:lag_abs + m]
    flux_nf = flux_nf.reshape(*lead, m) if lead else flux_nf.reshape(m)

    if reduction == "none":
        return flux_nf
    if reduction == "sum":
        return flux_nf.sum()
    if reduction == "mean":
        return flux_nf.mean() / (d ** (1.0 / float(norm)))
    return flux_nf.mean()  # batchmean


def _flux_ref(x, y, lag, norm, reduction):
    """Pure-JAX reference mirroring the PyTorch implementation."""
    if y is None:
        y = x
    if x.ndim == 1:
        x = x[:, None]
        y = y[:, None]
    if lag > 0:
        diff = x[..., lag:, :] - y[..., :-lag, :]
    elif lag < 0:
        diff = y[..., -lag:, :] - x[..., :lag, :]
    else:
        diff = x - y
    f = jnp.sum(jnp.abs(diff) ** norm, axis=-1) ** (1.0 / norm)
    if reduction == "none":
        return f
    if reduction == "sum":
        return f.sum()
    if reduction == "mean":
        return f.mean() / x.shape[-1] ** (1.0 / norm)
    return f.mean()


if __name__ == "__main__":
    key = jax.random.PRNGKey(0)
    kx, ky = jax.random.split(key)

    ok = True

    # 1) default config: self-flux, lag=1, norm=2, reduction='mean'
    B, N, D = 2, 16, 32
    x = jax.random.normal(kx, (B, N, D), dtype=jnp.float32)
    y = jax.random.normal(ky, (B, N, D), dtype=jnp.float32)
    out = jax.block_until_ready(flux(x, lag=1, norm=2, reduction="mean"))
    ref = _flux_ref(x, None, 1, 2, "mean")
    ok &= bool(jnp.allclose(out, ref, atol=1e-4, rtol=1e-4))

    # 2) target y, L1 norm, 'none'
    out = jax.block_until_ready(flux(x, y, lag=1, norm=1, reduction="none"))
    ref = _flux_ref(x, y, 1, 1, "none")
    ok &= out.shape == (B, N - 1)
    ok &= bool(jnp.allclose(out, ref, atol=1e-4, rtol=1e-4))

    # 3) multi-tile frame axis (carry across tile boundary), self-flux, lag=2
    x2 = jax.random.normal(kx, (2, 300, 16), dtype=jnp.float32)
    out = jax.block_until_ready(flux(x2, lag=2, norm=2, reduction="none", frame_tile=128))
    ref = _flux_ref(x2, None, 2, 2, "none")
    ok &= out.shape == (2, 298)
    ok &= bool(jnp.allclose(out, ref, atol=1e-4, rtol=1e-4))

    # 4) negative lag, p=3 norm, two operands, multi-tile
    xa = jax.random.normal(kx, (3, 200, 8), dtype=jnp.float32)
    ya = jax.random.normal(ky, (3, 200, 8), dtype=jnp.float32)
    out = jax.block_until_ready(flux(xa, ya, lag=-3, norm=3, reduction="sum", frame_tile=128))
    ref = _flux_ref(xa, ya, -3, 3, "sum")
    ok &= bool(jnp.allclose(out, ref, atol=1e-2, rtol=1e-3))

    # 5) batch > 8 (padded batch tile), 'batchmean'
    xb = jax.random.normal(ky, (9, 160, 8), dtype=jnp.float32)
    out = jax.block_until_ready(flux(xb, lag=1, norm=2, reduction="batchmean", frame_tile=128))
    ref = _flux_ref(xb, None, 1, 2, "batchmean")
    ok &= bool(jnp.allclose(out, ref, atol=1e-4, rtol=1e-4))

    print("KERNEL_OK" if ok else "MISMATCH")
</pallas_src>

<mosaic_0001>
module attributes {stable_mosaic.version = 11 : i64} {
  func.func @kernel(%arg0: i32, %arg1: i32, %arg2: memref<2x16x32xf32, #tpu.memory_space<vmem>>, %arg3: memref<2x16xf32, #tpu.memory_space<vmem>>, %arg4: memref<2x1x32xf32, #tpu.memory_space<vmem>>) attributes {dimension_semantics = [#tpu.dimension_semantics<parallel>, #tpu.dimension_semantics<arbitrary>], iteration_bounds = array<i64: 1, 1>, scalar_prefetch = 0 : i64, scratch_operands = 1 : i64, tpu.core_type = #tpu.core_type<tc>, window_params = [{transform_indices = @transform_0, window_bounds = array<i64: 2, 16, 32>}, {transform_indices = @transform_1, window_bounds = array<i64: 2, 16>}]} {
    %c0 = arith.constant 0 : index
    %c0_0 = arith.constant 0 : index
    %c0_1 = arith.constant 0 : index
    %0 = vector.load %arg2[%c0, %c0_0, %c0_1] : memref<2x16x32xf32, #tpu.memory_space<vmem>>, vector<2x16x32xf32>
    %c0_i32 = arith.constant 0 : i32
    %1 = arith.cmpi eq, %arg1, %c0_i32 : i32
    %2 = arith.extui %1 : i1 to i32
    %c0_i32_2 = arith.constant 0 : i32
    %3 = arith.cmpi ne, %2, %c0_i32_2 : i32
    scf.if %3 {
      %cst_13 = arith.constant 0.000000e+00 : f32
      %20 = vector.broadcast %cst_13 : f32 to vector<2x1x32xf32>
      %c0_14 = arith.constant 0 : index
      %c0_15 = arith.constant 0 : index
      %c0_16 = arith.constant 0 : index
      %21 = vector.load %arg4[%c0_14, %c0_15, %c0_16] : memref<2x1x32xf32, #tpu.memory_space<vmem>>, vector<2x1x32xf32>
      tpu.vector_store %arg4[%c0_14, %c0_15, %c0_16], %20 {strides = array<i32>} : memref<2x1x32xf32, #tpu.memory_space<vmem>>, vector<2x1x32xf32>,
    } else {
    }
    %c0_3 = arith.constant 0 : index
    %c0_4 = arith.constant 0 : index
    %c0_5 = arith.constant 0 : index
    %4 = vector.load %arg4[%c0_3, %c0_4, %c0_5] : memref<2x1x32xf32, #tpu.memory_space<vmem>>, vector<2x1x32xf32>
    %5 = vector.extract_strided_slice %0 {offsets = [0, 1, 0], sizes = [2, 15, 32], strides = [1, 1, 1]} : vector<2x16x32xf32> to vector<2x15x32xf32>
    %6 = vector.extract_strided_slice %0 {offsets = [0, 0, 0], sizes = [2, 15, 32], strides = [1, 1, 1]} : vector<2x16x32xf32> to vector<2x15x32xf32>
    %7 = arith.subf %5, %6 : vector<2x15x32xf32>
    %8 = arith.mulf %7, %7 : vector<2x15x32xf32>
    %cst = arith.constant dense<0.000000e+00> : vector<2x15xf32>
    %9 = vector.multi_reduction <add>, %8, %cst [2] : vector<2x15x32xf32> to vector<2x15xf32>
    %10 = math.sqrt %9 : vector<2x15xf32>
    %11 = vector.extract_strided_slice %0 {offsets = [0, 0, 0], sizes = [2, 1, 32], strides = [1, 1, 1]} : vector<2x16x32xf32> to vector<2x1x32xf32>
    %12 = arith.subf %11, %4 : vector<2x1x32xf32>
    %13 = arith.mulf %12, %12 : vector<2x1x32xf32>
    %cst_6 = arith.constant dense<0.000000e+00> : vector<2x1xf32>
    %14 = vector.multi_reduction <add>, %13, %cst_6 [2] : vector<2x1x32xf32> to vector<2x1xf32>
    %15 = math.sqrt %14 : vector<2x1xf32>
    %c0_7 = arith.constant 0 : index
    %c0_8 = arith.constant 0 : index
    %16 = vector.load %arg3[%c0_7, %c0_8] : memref<2x16xf32, #tpu.memory_space<vmem>>, vector<2x1xf32>
    tpu.vector_store %arg3[%c0_7, %c0_8], %15 {strides = array<i32>} : memref<2x16xf32, #tpu.memory_space<vmem>>, vector<2x1xf32>,
    %c0_9 = arith.constant 0 : index
    %c1 = arith.constant 1 : index
    %17 = vector.load %arg3[%c0_9, %c1] : memref<2x16xf32, #tpu.memory_space<vmem>>, vector<2x15xf32>
    tpu.vector_store %arg3[%c0_9, %c1], %10 {strides = array<i32>} : memref<2x16xf32, #tpu.memory_space<vmem>>, vector<2x15xf32>,
    %18 = vector.extract_strided_slice %0 {offsets = [0, 15, 0], sizes = [2, 1, 32], strides = [1, 1, 1]} : vector<2x16x32xf32> to vector<2x1x32xf32>
    %c0_10 = arith.constant 0 : index
    %c0_11 = arith.constant 0 : index
    %c0_12 = arith.constant 0 : index
    %19 = vector.load %arg4[%c0_10, %c0_11, %c0_12] : memref<2x1x32xf32, #tpu.memory_space<vmem>>, vector<2x1x32xf32>
    tpu.vector_store %arg4[%c0_10, %c0_11, %c0_12], %18 {strides = array<i32>} : memref<2x1x32xf32, #tpu.memory_space<vmem>>, vector<2x1x32xf32>,
    return
  }
  func.func @transform_0(%arg0: i32, %arg1: i32) -> (i32, i32, i32) {
    %c0_i32 = arith.constant 0 : i32
    %c0_i32_0 = arith.constant 0 : i32
    return %arg0, %arg1, %c0_i32 : i32, i32, i32
  }
  func.func @transform_1(%arg0: i32, %arg1: i32) -> (i32, i32) {
    %c0_i32 = arith.constant 0 : i32
    return %arg0, %arg1 : i32, i32
  }
}

</mosaic_0001>

<bundles_post_ra>
// kernel: tpu_custom_call.1
= control target key start
LH: loop header
LB: loop body
LE: loop exit
PB: predicated region body
PF: predicated region fallthrough
CT: control target
= control target key end

     0   :  { %6 = vsyncpa [#allocation4], 0  ;;  %s283_s0 = inlined_call_operand.hbm [shape: f32[2,16,32], index: 0, kind: input, shape index: {}]   ;;  %s284_s1 = inlined_call_operand.hbm [shape: f32[2,16], index: 1, kind: output, shape index: {}]  }
   0x1   :  { %7 = vsyncpa [#allocation5], 0  ;;  %s244_s6 = smov [#allocation3]  }
   0x2   :  { %s13_s7 = sshll.u32 %s244_s6, 4  ;;  %s14_s7 = int_to_ptr.vmem [resolvable:$true] %s13_s7 }
   0x3   :  { %s208_s8 = scalar_lea.vmem %s14_s7, 512  ;;  %p213_p1 = scmp.lt.s32.totalorder %s14_s7, %s14_s7 }
   0x4   :  { %p209_p0 = scmp.ne.s32.totalorder %s14_s7, %s208_s8  ;;  %p214_p2 = scmp.lt.s32.totalorder %s208_s8, %s208_s8 }
   0x6   :  { %p215_p3 = por %p214_p2, %p213_p1 }
   0x8   :  { %p216_p4 = pnand %p215_p3, %p209_p0 }
   0xa   :  { %219 = shalt.err (!%p216_p4)
}
   0xb   :  { %s245_s9 = smov 128   ;;  %s246_s10 = smov 8  }
   0xc   :  { %19 = dma.hbm_to_vmem [thread:$0]  %s283_s0, 512, %s14_s7, [#allocation4], %s245_s9, %s245_s9, %s246_s10  }
   0xd   :  { %240 = dma.done.wait [#allocation4], 512  }
   0xe   :  { %241 = vsyncadd [#allocation4], 4294966784  ;;  %vm31_vm0 = vcmask 253952   ;;  %v247_v0 = vmov 0.0   ;;  %v25_v1 = vld [vmem:[#allocation3 + $0x10] sm:$0xff]  ;;  %v23_v2 = vld [vmem:[#allocation3] sm:$0xff]  ;;  %v138_v35 = vlaneseq }
   0xf   :  { %32 = vst.msk [vmem:[#allocation2] sm:$0x1] %vm31_vm0, %v247_v0  ;;  %33 = vst.msk [vmem:[#allocation2 + $0x1] sm:$0x1] %vm31_vm0, %v247_v0  ;;  %v26_v3 = vld [vmem:[#allocation3 + $0x18] sm:$0xff]  ;;  %vm40_vm1 = vcmask 1040384  }
  0x10   :  { %vm165_vm2 = vcmask 261127   ;;  %v44_v4 = vrot.slane %v25_v1, 7  ;;  %v41_v5 = vrot.slane %v23_v2, 7  ;;  %v45_v6 = vrot.slane %v26_v3, 7  ;;  %v24_v7 = vld [vmem:[#allocation3 + $0x8] sm:$0xff]  ;;  %s248_s0 = smov [#allocation6]  }
  0x11   :  { %v42_v8 = vrot.slane %v24_v7, 7  ;;  %vm59_vm3 = vcmask 261121   ;;  %vm63_vm4 = vcmask 261120   ;;  %v139_v38 = vand.u32 127, %v138_v35  ;;  %s174_s13 = sshll.u32 %s248_s0, 4  ;;  %s175_s13 = int_to_ptr.vmem [resolvable:$true] %s174_s13 }
  0x12   :  { %v53_v11 = vsub.f32 %v25_v1, %v44_v4  ;;  %v51_v12 = vsub.f32 %v23_v2, %v41_v5  ;;  %v46_v13 = vsel %vm40_vm1, %v44_v4, %v45_v6  ;;  %v141_v39 = vshrl.u32 %v138_v35, 7  ;;  %s220_s14 = scalar_lea.vmem %s175_s13, 32  ;;  %p225_p6 = scmp.lt.s32.totalorder %s175_s13, %s175_s13 }
  0x13   :  { %v54_v14 = vsub.f32 %v26_v3, %v46_v13  ;;  %v43_v15 = vsel %vm40_vm1, %v41_v5, %v42_v8  ;;  %v144_v40 = vadd.s32 4294967288, %v139_v38  ;;  %vm149_vm7 = vcmask 130112   ;;  %p221_p5 = scmp.ne.s32.totalorder %s175_s13, %s220_s14  ;;  %p226_p7 = scmp.lt.s32.totalorder %s220_s14, %s220_s14 }
  0x14   :  { %v57_v17 = vmul.f32 %v53_v11, %v53_v11  ;;  %v55_v18 = vmul.f32 %v51_v12, %v51_v12  ;;  %v52_v19 = vsub.f32 %v24_v7, %v43_v15  ;;  %v142_v45 = vsub.s32 %v139_v38, %v141_v39 }
  0x15   :  { %v58_v21 = vmul.f32 %v54_v14, %v54_v14  ;;  %v147_v46 = vsub.s32 %v144_v40, %v141_v39  ;;  %vm160_vm14 = vcmask 1042434   ;;  %p227_p8 = por %p226_p7, %p225_p6 }
  0x16   :  { %v34_v9 = vld [vmem:[#allocation2] sm:$0x1]  ;;  %v35_v10 = vld [vmem:[#allocation2 + $0x1] sm:$0x1]  ;;  %v67_v22 = vsel %vm59_vm3, %v57_v17, 0.0  ;;  %v60_v23 = vsel %vm59_vm3, %v55_v18, 0.0  ;;  %v56_v24 = vmul.f32 %v52_v19, %v52_v19 }
  0x17   :  { %166 = vst.msk [vmem:[#allocation2 - $0x7] sm:$0x80] %vm165_vm2, %v24_v7  ;;  %167 = vst.msk [vmem:[#allocation2 - $0x6] sm:$0x80] %vm165_vm2, %v26_v3  ;;  %v101_v16 = vsub.f32 %v23_v2, %v34_v9  ;;  %v102_v20 = vsub.f32 %v25_v1, %v35_v10  ;;  %68 = vadd.xlane.f32.xlu1 %v67_v22  ;;  %61 = vadd.xlane.f32.xlu0 %v60_v23  ;;  %v70_v25 = vsel %vm63_vm4, %v58_v21, 0.0  ;;  %vm129_vm2 = vcmask 1041409   ;;  %p228_p9 = pnand %p227_p8, %p221_p5 }
  0x18   :  { %v64_v26 = vsel %vm63_vm4, %v56_v24, 0.0  ;;  %vm132_vm3 = vcmask 1024  }
  0x19   :  { %v103_v27 = vmul.f32 %v101_v16, %v101_v16  ;;  %v104_v28 = vmul.f32 %v102_v20, %v102_v20 }
  0x1b   :  { %71 = vadd.xlane.f32.xlu1 %v70_v25  ;;  %65 = vadd.xlane.f32.xlu0 %v64_v26  ;;  %v106_v29 = vsel %vm31_vm0, %v103_v27, 0.0  ;;  %v109_v30 = vsel %vm31_vm0, %v104_v28, 0.0 }
  0x1f   :  { %107 = vadd.xlane.f32.xlu1 %v106_v29  ;;  %110 = vadd.xlane.f32.xlu0 %v109_v30 }
  0xa0   :  { %v69_v31 = vpop.xlane.xlu1 %68  ;;  %v62_v32 = vpop.xlane.xlu0 %61 }
  0xa1   :  { %188 = vrsqrt.f32 %v69_v31  ;;  %vm89_vm5 = vcmp.eq.f32.partialorder %v69_v31, inf  ;;  %vm91_vm6 = vcmp.eq.f32.partialorder %v69_v31, 0.0  ;;  %v92_v48 = vand.u32 2147483648, %v69_v31 }
  0xa2   :  { %190 = vrsqrt.f32 %v62_v32  ;;  %vm75_vm8 = vcmp.eq.f32.partialorder %v62_v32, inf  ;;  %v78_v50 = vand.u32 2147483648, %v62_v32  ;;  %vm77_vm12 = vcmp.eq.f32.partialorder %v62_v32, 0.0 }
  0xa4   :  { %v72_v33 = vpop.xlane.xlu1 %71  ;;  %v66_v34 = vpop.xlane.xlu0 %65 }
  0xa5   :  { %192 = vrsqrt.f32 %v72_v33  ;;  %vm96_vm9 = vcmp.eq.f32.partialorder %v72_v33, inf  ;;  %v99_v54 = vand.u32 2147483648, %v72_v33  ;;  %vm98_vm10 = vcmp.eq.f32.partialorder %v72_v33, 0.0 }
  0xa6   :  { %194 = vrsqrt.f32 %v66_v34  ;;  %vm82_vm11 = vcmp.eq.f32.partialorder %v66_v34, inf  ;;  %v85_v57 = vand.u32 2147483648, %v66_v34  ;;  %vm84_vm13 = vcmp.eq.f32.partialorder %v66_v34, 0.0 }
  0xa8   :  { %v268_v36 = vpop.xlane.xlu1 %107  ;;  %v111_v37 = vpop.xlane.xlu0 %110 }
  0xa9   :  { %196 = vrsqrt.f32 %v268_v36  ;;  %vm114_vm15 = vcmp.eq.f32.partialorder %v268_v36, inf  ;;  %vm121_vm0 = vcmp.eq.f32.partialorder %v111_v37, inf  ;;  %vm123_vm1 = vcmp.eq.f32.partialorder %v111_v37, 0.0 }
  0xaa   :  { %198 = vrsqrt.f32 %v111_v37  ;;  %v124_v5 = vand.u32 2147483648, %v111_v37  ;;  %v117_v10 = vand.u32 2147483648, %v268_v36  ;;  %vm116_vm4 = vcmp.eq.f32.partialorder %v268_v36, 0.0 }
  0xae   :  { %v189_v41 = vpop.eup %188 }
  0xaf   :  { %v191_v42 = vpop.eup %190  ;;  %v88_v43 = vmul.f32 %v189_v41, %v69_v31 }
  0xb0   :  { %v74_v44 = vmul.f32 %v191_v42, %v62_v32 }
  0xb1   :  { %v90_v52 = vsel %vm89_vm5, %v69_v31, %v88_v43  ;;  %vm163_vm5 = vcmask 124937  }
  0xb2   :  { %v193_v47 = vpop.eup %192  ;;  %v76_v53 = vsel %vm75_vm8, %v62_v32, %v74_v44  ;;  %v93_v1 = vsel %vm91_vm6, %v92_v48, %v90_v52 }
  0xb3   :  { %v195_v49 = vpop.eup %194  ;;  %v95_v51 = vmul.f32 %v193_v47, %v72_v33  ;;  %v79_v63 = vsel %vm77_vm12, %v78_v50, %v76_v53  ;;  %v154_v9 = vrot.slane %v93_v1, %v142_v45 }
  0xb4   :  { %v81_v55 = vmul.f32 %v195_v49, %v66_v34  ;;  %v143_v8 = vrot.slane %v79_v63, %v142_v45 }
  0xb5   :  { %v97_v56 = vsel %vm96_vm9, %v72_v33, %v95_v51 }
  0xb6   :  { %v197_v58 = vpop.eup %196  ;;  %v83_v59 = vsel %vm82_vm11, %v66_v34, %v81_v55  ;;  %v100_v60 = vsel %vm98_vm10, %v99_v54, %v97_v56 }
  0xb7   :  { %v199_v61 = vpop.eup %198  ;;  %v113_v62 = vmul.f32 %v197_v58, %v268_v36  ;;  %v86_v0 = vsel %vm84_vm13, %v85_v57, %v83_v59  ;;  %v158_v4 = vrot.slane %v100_v60, %v147_v46 }
  0xb8   :  { %v120_v2 = vmul.f32 %v199_v61, %v111_v37  ;;  %v148_v3 = vrot.slane %v86_v0, %v147_v46 }
  0xb9   :  { %v115_v6 = vsel %vm114_vm15, %v268_v36, %v113_v62  ;;  %v159_v14 = vsel %vm149_vm7, %v158_v4, %v154_v9 }
  0xba   :  { %v122_v7 = vsel %vm121_vm0, %v111_v37, %v120_v2  ;;  %v150_v13 = vsel %vm149_vm7, %v148_v3, %v143_v8  ;;  %v118_v15 = vsel %vm116_vm4, %v117_v10, %v115_v6 }
  0xbb   :  { %v125_v11 = vsel %vm123_vm1, %v124_v5, %v122_v7  ;;  %v161_v17 = vsel %vm160_vm14, %v159_v14, %v150_v13 }
  0xbc   :  { %v128_v12 = vrot.slane %v125_v11, 7 }
  0xbe   :  { %v130_v16 = vsel %vm129_vm2, %v128_v12, %v118_v15 }
  0xbf   :  { %133 = vst.msk [vmem:[#allocation6] sm:$0x3] %vm132_vm3, %v130_v16 }
  0xc0   :  { %164 = vst.msk [vmem:[#allocation6 - $0x1] sm:$0x6] %vm163_vm5, %v161_v17 }
  0xc1   :  { %231 = shalt.err (!%p228_p9)
}
  0xc2   :  { %177 = dma.vmem_to_hbm [thread:$0]  %s175_s13, 32, %s284_s1, [#allocation5]  }
  0xc3   :  { %242 = dma.done.wait [#allocation5], 32  }
  0xc4   :  { %243 = vsyncadd [#allocation5], 4294967264 }
  0xc5   :  { %181 = vsyncpa [#allocation4], 1 }
  0xc6   :  { %182 = vsyncpa [#allocation5], 1 }

</bundles_post_ra>
